<compile_context>
chip_gen: v6e
topology: v6e:2x2x1
jax: 0.10.0
libtpu: 0.0.40
codegen_flags: <defaults>
</compile_context>

<pallas_src>
import math

import jax
import jax.numpy as jnp
from jax.experimental import pallas as pl
from jax.experimental.pallas import tpu as pltpu


def _build_pe(d_model: int, max_len: int = 5000, dtype=jnp.float32) -> jnp.ndarray:
    """Deterministic sinusoidal positional-encoding table, shape (max_len, d_model)."""
    position = jnp.arange(max_len, dtype=jnp.float32)[:, None]              # (max_len, 1)
    div_term = jnp.exp(
        jnp.arange(0, d_model, 2, dtype=jnp.float32) * (-math.log(10000.0) / d_model)
    )                                                                        # (d_model/2,)
    pe = jnp.zeros((max_len, d_model), dtype=jnp.float32)
    pe = pe.at[:, 0::2].set(jnp.sin(position * div_term))
    pe = pe.at[:, 1::2].set(jnp.cos(position * div_term))
    return pe.astype(dtype)


def _add_pe_kernel(x_ref, pe_ref, o_ref):
    # x_ref / o_ref: (BT, TR, W);  pe_ref: (TR, W) -> broadcast over the batch-tile dim.
    o_ref[...] = x_ref[...] + pe_ref[...]


def _sublane(dtype) -> int:
    """Rows per packed sublane group: 8 for f32, 16 for bf16/f16, 32 for int8/fp8."""
    bits = jnp.dtype(dtype).itemsize * 8
    return max(8, 256 // bits)


def _target_tile_bytes_and_vmem_limit():
    """Generation-aware tile-size target and scoped-VMEM limit."""
    try:
        vmem_cap = int(pltpu.get_tpu_info().vmem_capacity_bytes)
    except Exception:
        vmem_cap = 64 * 1024 * 1024  # conservative (v7x-sized) fallback
    # ~8 MiB tiles on every current generation (v7x: 64 MiB VMEM -> 8 MiB).
    target = max(2 << 20, min(8 << 20, vmem_cap // 8))
    # 2x double-buffered x + 2x out + pe + headroom, always below physical VMEM.
    limit = max(32 << 20, min(vmem_cap - (8 << 20), 96 << 20))
    return target, limit


def _lane_dense_view(S: int, D: int):
    """Pick a (rows, width) layout whose last dim is lane-dense when possible."""
    if D % 128 == 0:
        return S, D, False                 # already lane-dense, no reshape
    if (S * D) % 128 == 0:
        return (S * D) // 128, 128, True   # view (B, S, D) as (B, S*D/128, 128)
    return S, D, False                     # fallback: masked partial stores on the last dim


def _pick_tiles(B: int, R: int, W: int, itemsize: int, target_bytes: int, sublane: int):
    """Choose (batch_tile BT, row_tile TR) so one x tile is ~target_bytes."""
    row_bytes = W * itemsize
    rows_per_target = max(1, target_bytes // row_bytes)
    if rows_per_target >= R:
        # All rows of one batch element fit: fuse batch rows to amortize per-step overhead.
        tr = R
        bt = max(1, min(B, rows_per_target // R))
    else:
        tr = max(sublane, (rows_per_target // sublane) * sublane)
        tr = min(tr, R)
        bt = 1
    # Megacore: if everything collapsed into a single block but the tensor is
    # non-trivial, split one parallel axis so both TensorCores (v7x) get work.
    total_bytes = B * R * row_bytes
    if bt >= B and tr >= R and total_bytes > (1 << 20):
        if B >= 2:
            bt = pl.cdiv(B, 2)
        elif R >= 2 * sublane:
            half = pl.cdiv(R, 2)
            tr = min(R, ((half + sublane - 1) // sublane) * sublane)
    return bt, tr


def positional_encoding_forward(x: jnp.ndarray, pe: jnp.ndarray,
                                donate_x: bool = False) -> jnp.ndarray:
    """x: (B, S, D); pe: (max_len, D).  Returns x + pe[:S] (broadcast over batch)."""
    B, S, D = x.shape
    max_len = pe.shape[0]
    if S > max_len:
        raise ValueError(
            f"seq_len {S} exceeds positional-encoding table max_len {max_len}"
        )

    itemsize = jnp.dtype(x.dtype).itemsize
    pe_slice = pe[:S, :]
    if pe_slice.dtype != x.dtype:
        # No-op when the table is built/held in model dtype (recommended).
        pe_slice = pe_slice.astype(x.dtype)

    # Lane-dense layout: last dim a multiple of 128 whenever possible.
    R, W, reshaped = _lane_dense_view(S, D)
    x_view = x.reshape(B, R, W) if reshaped else x
    pe_view = pe_slice.reshape(R, W) if reshaped else pe_slice

    target_bytes, vmem_limit = _target_tile_bytes_and_vmem_limit()
    bt, tr = _pick_tiles(B, R, W, itemsize, target_bytes, _sublane(x.dtype))

    # Row axis OUTER (slow), batch axis INNER (fast): the pe block index only
    # depends on the row axis, so Pallas keeps the pe tile resident (no re-DMA)
    # across the whole batch sweep.
    grid = (pl.cdiv(R, tr), pl.cdiv(B, bt))

    out = pl.pallas_call(
        _add_pe_kernel,
        out_shape=jax.ShapeDtypeStruct((B, R, W), x.dtype),
        grid_spec=pltpu.PrefetchScalarGridSpec(
            num_scalar_prefetch=0,
            grid=grid,
            in_specs=[
                pl.BlockSpec((bt, tr, W), lambda r, b: (b, r, 0)),  # x tile
                pl.BlockSpec((tr, W), lambda r, b: (r, 0)),         # pe tile (resident over batch)
            ],
            out_specs=pl.BlockSpec((bt, tr, W), lambda r, b: (b, r, 0)),
        ),
        compiler_params=pltpu.CompilerParams(
            dimension_semantics=("parallel", "parallel"),
            vmem_limit_bytes=vmem_limit,
        ),
        cost_estimate=pl.CostEstimate(
            flops=B * S * D,
            transcendentals=0,
            bytes_accessed=(2 * B * S * D + S * D) * itemsize,
        ),
        # In-place PE add when x is donatable (e.g. inside a transformer stack).
        input_output_aliases=({0: 0} if donate_x else {}),
    )(x_view, pe_view)

    return out.reshape(B, S, D) if reshaped else out


if __name__ == "__main__":
    # Small shapes consistent with the module: batch=2, seq=8, d_model=32.
    B, S, D = 2, 8, 32
    max_len = 64  # keep the table small for the demo (module default is 5000)

    key = jax.random.PRNGKey(0)
    x = jax.random.normal(key, (B, S, D), dtype=jnp.float32)

    # Build the table directly in model dtype so no per-call cast is needed.
    pe = _build_pe(D, max_len=max_len, dtype=x.dtype)

    out = positional_encoding_forward(x, pe)
    out = jax.block_until_ready(out)

    # Reference check in plain JAX (same semantics as the PyTorch forward).
    ref = x + pe[None, :S, :]
    assert out.shape == (B, S, D)
    assert jnp.allclose(out, ref, atol=1e-6), "mismatch vs reference"

    print("KERNEL_OK")
</pallas_src>

<mosaic_0001>
module attributes {stable_mosaic.version = 11 : i64} {
  func.func @_add_pe_kernel(%arg0: i32, %arg1: i32, %arg2: memref<2x2x128xf32, #tpu.memory_space<vmem>>, %arg3: memref<2x128xf32, #tpu.memory_space<vmem>>, %arg4: memref<2x2x128xf32, #tpu.memory_space<vmem>>) attributes {dimension_semantics = [#tpu.dimension_semantics<parallel>, #tpu.dimension_semantics<parallel>], iteration_bounds = array<i64: 1, 1>, scalar_prefetch = 0 : i64, scratch_operands = 0 : i64, tpu.core_type = #tpu.core_type<tc>, window_params = [{transform_indices = @transform_0, window_bounds = array<i64: 2, 2, 128>}, {transform_indices = @transform_1, window_bounds = array<i64: 2, 128>}, {transform_indices = @transform_2, window_bounds = array<i64: 2, 2, 128>}]} {
    %c0 = arith.constant 0 : index
    %c0_0 = arith.constant 0 : index
    %c0_1 = arith.constant 0 : index
    %0 = vector.load %arg2[%c0, %c0_0, %c0_1] : memref<2x2x128xf32, #tpu.memory_space<vmem>>, vector<2x2x128xf32>
    %c0_2 = arith.constant 0 : index
    %c0_3 = arith.constant 0 : index
    %1 = vector.load %arg3[%c0_2, %c0_3] : memref<2x128xf32, #tpu.memory_space<vmem>>, vector<2x128xf32>
    %2 = vector.shape_cast %1 : vector<2x128xf32> to vector<1x2x128xf32>
    %3 = vector.broadcast %2 : vector<1x2x128xf32> to vector<2x2x128xf32>
    %4 = arith.addf %0, %3 : vector<2x2x128xf32>
    %c0_4 = arith.constant 0 : index
    %c0_5 = arith.constant 0 : index
    %c0_6 = arith.constant 0 : index
    %5 = vector.load %arg4[%c0_4, %c0_5, %c0_6] : memref<2x2x128xf32, #tpu.memory_space<vmem>>, vector<2x2x128xf32>
    tpu.vector_store %arg4[%c0_4, %c0_5, %c0_6], %4 {strides = array<i32>} : memref<2x2x128xf32, #tpu.memory_space<vmem>>, vector<2x2x128xf32>,
    return
  }
  func.func @transform_0(%arg0: i32, %arg1: i32) -> (i32, i32, i32) {
    %c0_i32 = arith.constant 0 : i32
    %c0_i32_0 = arith.constant 0 : i32
    return %arg1, %arg0, %c0_i32 : i32, i32, i32
  }
  func.func @transform_1(%arg0: i32, %arg1: i32) -> (i32, i32) {
    %c0_i32 = arith.constant 0 : i32
    %c0_i32_0 = arith.constant 0 : i32
    return %arg0, %c0_i32 : i32, i32
  }
  func.func @transform_2(%arg0: i32, %arg1: i32) -> (i32, i32, i32) {
    %c0_i32 = arith.constant 0 : i32
    %c0_i32_0 = arith.constant 0 : i32
    return %arg1, %arg0, %c0_i32 : i32, i32, i32
  }
}

</mosaic_0001>

<bundles_post_ra>
// kernel: tpu_custom_call.1
= control target key start
LH: loop header
LB: loop body
LE: loop exit
PB: predicated region body
PF: predicated region fallthrough
CT: control target
= control target key end

     0   :  { %7 = vsyncpa [#allocation3], 0  ;;  %s169_s0 = inlined_call_operand.hbm [shape: f32[2,2,128], index: 0, kind: input, shape index: {}]   ;;  %s170_s1 = inlined_call_operand.hbm [shape: f32[2,128], index: 1, kind: input, shape index: {}]   ;;  %s171_s2 = inlined_call_operand.hbm [shape: f32[2,2,128], index: 2, kind: output, shape index: {}]  }
   0x1   :  { %8 = vsyncpa [#allocation6], 0 }
   0x2   :  { %9 = vsyncpa [#allocation4], 0  ;;  %s134_s9 = smov [#allocation2]  }
   0x3   :  { %s15_s10 = sshll.u32 %s134_s9, 4  ;;  %s16_s10 = int_to_ptr.vmem [resolvable:$true] %s15_s10 }
   0x4   :  { %s76_s11 = scalar_lea.vmem %s16_s10, 64  ;;  %p81_p1 = scmp.lt.s32.totalorder %s16_s10, %s16_s10 }
   0x5   :  { %p77_p0 = scmp.ne.s32.totalorder %s16_s10, %s76_s11  ;;  %p82_p2 = scmp.lt.s32.totalorder %s76_s11, %s76_s11 }
   0x7   :  { %p83_p3 = por %p82_p2, %p81_p1 }
   0x9   :  { %p84_p4 = pnand %p83_p3, %p77_p0 }
   0xb   :  { %87 = shalt.err (!%p84_p4)
}
   0xc   :  { %s135_s12 = smov 32   ;;  %s136_s13 = smov 2  }
   0xd   :  { %21 = dma.hbm_to_vmem [thread:$0]  %s169_s0, 64, %s16_s10, [#allocation3], %s135_s12, %s135_s12, %s136_s13  }
   0xe   :  { %s137_s16 = smov [#allocation5]  }
   0xf   :  { %s28_s17 = sshll.u32 %s137_s16, 4  ;;  %s29_s17 = int_to_ptr.vmem [resolvable:$true] %s28_s17 }
  0x10   :  { %s96_s18 = scalar_lea.vmem %s29_s17, 32  ;;  %p101_p6 = scmp.lt.s32.totalorder %s29_s17, %s29_s17 }
  0x11   :  { %p97_p5 = scmp.ne.s32.totalorder %s29_s17, %s96_s18  ;;  %p102_p7 = scmp.lt.s32.totalorder %s96_s18, %s96_s18 }
  0x13   :  { %p103_p8 = por %p102_p7, %p101_p6 }
  0x15   :  { %p104_p9 = pnand %p103_p8, %p97_p5 }
  0x17   :  { %107 = shalt.err (!%p104_p9)
}
  0x18   :  { %31 = dma.hbm_to_vmem [thread:$0]  %s170_s1, 32, %s29_s17, [#allocation6]  }
  0x19   :  { %128 = dma.done.wait [#allocation3], 64  }
  0x1a   :  { %129 = vsyncadd [#allocation3], 4294967232 }
  0x1b   :  { %130 = dma.done.wait [#allocation6], 32  }
  0x1c   :  { %131 = vsyncadd [#allocation6], 4294967264  ;;  %s138_s21 = smov [#allocation7]   ;;  %v38_v0 = vld [vmem:[#allocation2] sm:$0x3] }
  0x1d   :  { %s50_s0 = sshll.u32 %s138_s21, 4  ;;  %v40_v1 = vld [vmem:[#allocation5] sm:$0x3]  ;;  %v39_v2 = vld [vmem:[#allocation2 + $0x2] sm:$0x3]  ;;  %s51_s0 = int_to_ptr.vmem [resolvable:$true] %s50_s0 }
  0x1e   :  { %v41_v3 = vadd.f32 %v40_v1, %v38_v0  ;;  %v42_v4 = vadd.f32 %v40_v1, %v39_v2  ;;  %s108_s22 = scalar_lea.vmem %s51_s0, 64  ;;  %p113_p11 = scmp.lt.s32.totalorder %s51_s0, %s51_s0 }
  0x1f   :  { %p109_p10 = scmp.ne.s32.totalorder %s51_s0, %s108_s22  ;;  %p114_p12 = scmp.lt.s32.totalorder %s108_s22, %s108_s22 }
  0x20   :  { %43 = vst [vmem:[#allocation7] sm:$0x3] %v41_v3  ;;  %44 = vst [vmem:[#allocation7 + $0x2] sm:$0x3] %v42_v4 }
  0x21   :  { %p115_p13 = por %p114_p12, %p113_p11 }
  0x23   :  { %p116_p0 = pnand %p115_p13, %p109_p10 }
  0x25   :  { %119 = shalt.err (!%p116_p0)
}
  0x26   :  { %56 = dma.vmem_to_hbm [thread:$0]  %s51_s0, 64, %s171_s2, [#allocation4], %s135_s12, %s135_s12, %s136_s13  }
  0x27   :  { %132 = dma.done.wait [#allocation4], 64  }
  0x28   :  { %133 = vsyncadd [#allocation4], 4294967232 }
  0x29   :  { %60 = vsyncpa [#allocation3], 1 }
  0x2a   :  { %61 = vsyncpa [#allocation6], 1 }
  0x2b   :  { %62 = vsyncpa [#allocation4], 1 }

</bundles_post_ra>
